<compile_context>
chip_gen: v7x
topology: tpu7x:2x2x1
jax: 0.10.0
libtpu: 0.0.40
codegen_flags: <defaults>
</compile_context>

<pallas_src>
import math

import jax
import jax.numpy as jnp
from jax.experimental import pallas as pl
from jax.experimental.pallas import tpu as pltpu


def _conv_matmul_kernel(w_ref, b_ref, p_ref, o_ref):
    # w_ref: (Cout, K2C)     flattened conv weight
    # b_ref: (Cout, 1)       bias
    # p_ref: (1, K2C, OHW)   im2col patch matrix for one batch element
    # o_ref: (1, Cout, OHW)  lane-dense output (OHW is a multiple of 128)
    acc = jnp.dot(w_ref[...], p_ref[0], preferred_element_type=jnp.float32)
    acc = acc + b_ref[...]                 # broadcast (Cout, 1) over lanes
    o_ref[0] = jnp.maximum(acc, 0.0).astype(o_ref.dtype)


def _im2col(x_nchw, KH, KW, stride, padding, OH, OW):
    """Layout plumbing only (no FLOPs): build (N, Cin*KH*KW, OH*OW) patch matrices
    whose row ordering matches weight.reshape(Cout, Cin*KH*KW)."""
    N, Cin, H, W = x_nchw.shape
    xp = jnp.pad(x_nchw, ((0, 0), (0, 0), (padding, padding), (padding, padding)))
    cols = []
    for kh in range(KH):
        for kw in range(KW):
            sl = jax.lax.slice(
                xp,
                (0, 0, kh, kw),
                (N, Cin, kh + (OH - 1) * stride + 1, kw + (OW - 1) * stride + 1),
                (1, 1, stride, stride),
            )  # (N, Cin, OH, OW)
            cols.append(sl)
    p = jnp.stack(cols, axis=0)                     # (KH*KW, N, Cin, OH, OW)
    p = jnp.transpose(p, (1, 2, 0, 3, 4))           # (N, Cin, KH*KW, OH, OW)
    return p.reshape(N, Cin * KH * KW, OH * OW)     # row idx = cin*KH*KW + kh*KW + kw


def conv_forward(x_nchw, weight_oihw, bias, *, stride=1, padding=0):
    """Pallas implementation of Conv.forward: returns (relu(conv2d(x)), {})."""
    N, Cin, H, W = x_nchw.shape
    Cout, Cin_w, KH, KW = weight_oihw.shape
    assert Cin == Cin_w

    OH = (H + 2 * padding - KH) // stride + 1
    OW = (W + 2 * padding - KW) // stride + 1
    K2C = Cin * KH * KW
    OHW = OH * OW

    # Wrapper-side glue: im2col + weight/bias flattening (pure data movement).
    patches = _im2col(x_nchw, KH, KW, stride, padding, OH, OW)        # (N, K2C, OHW)
    w2 = weight_oihw.reshape(Cout, K2C).astype(jnp.float32)           # (Cout, K2C)
    b2 = bias.reshape(Cout, 1).astype(jnp.float32)                    # (Cout, 1)

    out = pl.pallas_call(
        _conv_matmul_kernel,
        out_shape=jax.ShapeDtypeStruct((N, Cout, OHW), jnp.float32),
        grid_spec=pltpu.PrefetchScalarGridSpec(
            num_scalar_prefetch=0,
            grid=(N,),
            in_specs=[
                pl.BlockSpec((Cout, K2C), lambda n: (0, 0)),
                pl.BlockSpec((Cout, 1), lambda n: (0, 0)),
                pl.BlockSpec((1, K2C, OHW), lambda n: (n, 0, 0)),
            ],
            out_specs=pl.BlockSpec((1, Cout, OHW), lambda n: (n, 0, 0)),
        ),
        compiler_params=pltpu.CompilerParams(dimension_semantics=("parallel",)),
    )(w2, b2, patches)

    # Free trailing reshape; no transpose needed (output is already channel-major).
    out_nchw = out.reshape(N, Cout, OH, OW)
    # dropout_rate is None in this config -> no dropout layer.
    return out_nchw, {}


def init_conv_params(key, in_channels, out_channels, kernel_size):
    """Deterministic xavier_uniform_ weight + bias filled with 0.01 (matches __init__)."""
    KH = KW = kernel_size
    fan_in = in_channels * KH * KW
    fan_out = out_channels * KH * KW
    bound = math.sqrt(6.0 / (fan_in + fan_out))
    weight = jax.random.uniform(
        key, (out_channels, in_channels, KH, KW),
        minval=-bound, maxval=bound, dtype=jnp.float32,
    )
    bias = jnp.full((out_channels,), 0.01, dtype=jnp.float32)
    return weight, bias


if __name__ == "__main__":
    key = jax.random.PRNGKey(0)
    k_x, k_w = jax.random.split(key)

    N, Cin, H, W = 2, 4, 16, 16
    Cout, K, stride, padding = 8, 3, 1, 1

    x = jax.random.normal(k_x, (N, Cin, H, W), dtype=jnp.float32)
    weight, bias = init_conv_params(k_w, Cin, Cout, K)

    out, extras = conv_forward(x, weight, bias, stride=stride, padding=padding)
    out = jax.block_until_ready(out)

    # Reference check with XLA's conv to validate semantics.
    ref = jax.lax.conv_general_dilated(
        x, weight, window_strides=(stride, stride),
        padding=[(padding, padding), (padding, padding)],
        dimension_numbers=("NCHW", "OIHW", "NCHW"),
    ) + bias.reshape(1, Cout, 1, 1)
    ref = jnp.maximum(ref, 0.0)

    assert out.shape == (N, Cout, H, W)
    assert isinstance(extras, dict) and len(extras) == 0
    assert jnp.allclose(out, ref, atol=1e-4, rtol=1e-4)
    print("KERNEL_OK")
</pallas_src>

<mosaic_0001>
module attributes {stable_mosaic.version = 11 : i64} {
  func.func @_conv_matmul_kernel(%arg0: i32, %arg1: memref<8x36xf32, #tpu.memory_space<vmem>>, %arg2: memref<8x1xf32, #tpu.memory_space<vmem>>, %arg3: memref<1x36x256xf32, #tpu.memory_space<vmem>>, %arg4: memref<1x8x256xf32, #tpu.memory_space<vmem>>) attributes {dimension_semantics = [#tpu.dimension_semantics<parallel>], iteration_bounds = array<i64: 2>, scalar_prefetch = 0 : i64, scratch_operands = 0 : i64, tpu.core_type = #tpu.core_type<tc>, window_params = [{pipeline_mode = #tpu.pipeline_mode<synchronous>, transform_indices = @transform_0, window_bounds = array<i64: 8, 36>}, {pipeline_mode = #tpu.pipeline_mode<synchronous>, transform_indices = @transform_1, window_bounds = array<i64: 8, 1>}, {transform_indices = @transform_2, window_bounds = array<i64: 1, 36, 256>}, {transform_indices = @transform_3, window_bounds = array<i64: 1, 8, 256>}]} {
    %c0 = arith.constant 0 : index
    %c0_0 = arith.constant 0 : index
    %0 = vector.load %arg1[%c0, %c0_0] : memref<8x36xf32, #tpu.memory_space<vmem>>, vector<8x36xf32>
    %c0_1 = arith.constant 0 : index
    %c0_2 = arith.constant 0 : index
    %c0_3 = arith.constant 0 : index
    %1 = vector.load %arg3[%c0_1, %c0_2, %c0_3] : memref<1x36x256xf32, #tpu.memory_space<vmem>>, vector<1x36x256xf32>
    %2 = vector.shape_cast %1 : vector<1x36x256xf32> to vector<36x256xf32>
    %cst = arith.constant dense<0.000000e+00> : vector<8x256xf32>
    %3 = tpu.matmul %0, %2, %cst {dimension_numbers = #tpu.dot_dimension_numbers<[1], [0], [0], [1], [0, 0, 1, 1], [], []>} : vector<8x36xf32>, vector<36x256xf32>, vector<8x256xf32> -> vector<8x256xf32>
    %c0_4 = arith.constant 0 : index
    %c0_5 = arith.constant 0 : index
    %4 = vector.load %arg2[%c0_4, %c0_5] : memref<8x1xf32, #tpu.memory_space<vmem>>, vector<8x1xf32>
    %5 = vector.broadcast %4 : vector<8x1xf32> to vector<8x256xf32>
    %6 = arith.addf %3, %5 : vector<8x256xf32>
    %cst_6 = arith.constant 0.000000e+00 : f32
    %7 = vector.broadcast %cst_6 : f32 to vector<8x256xf32>
    %8 = arith.maximumf %6, %7 : vector<8x256xf32>
    %c0_7 = arith.constant 0 : index
    %c0_8 = arith.constant 0 : index
    %c0_9 = arith.constant 0 : index
    %9 = vector.load %arg4[%c0_7, %c0_8, %c0_9] : memref<1x8x256xf32, #tpu.memory_space<vmem>>, vector<1x8x256xf32>
    %10 = vector.shape_cast %9 : vector<1x8x256xf32> to vector<8x256xf32>
    %11 = vector.shape_cast %8 : vector<8x256xf32> to vector<1x8x256xf32>
    tpu.vector_store %arg4[%c0_7, %c0_8, %c0_9], %11 {strides = array<i32>} : memref<1x8x256xf32, #tpu.memory_space<vmem>>, vector<1x8x256xf32>,
    return
  }
  func.func @transform_0(%arg0: i32) -> (i32, i32) {
    %c0_i32 = arith.constant 0 : i32
    %c0_i32_0 = arith.constant 0 : i32
    %c0_i32_1 = arith.constant 0 : i32
    return %c0_i32, %c0_i32_0 : i32, i32
  }
  func.func @transform_1(%arg0: i32) -> (i32, i32) {
    %c0_i32 = arith.constant 0 : i32
    %c0_i32_0 = arith.constant 0 : i32
    %c0_i32_1 = arith.constant 0 : i32
    return %c0_i32, %c0_i32_0 : i32, i32
  }
  func.func @transform_2(%arg0: i32) -> (i32, i32, i32) {
    %c0_i32 = arith.constant 0 : i32
    %c0_i32_0 = arith.constant 0 : i32
    %c0_i32_1 = arith.constant 0 : i32
    return %arg0, %c0_i32, %c0_i32_0 : i32, i32, i32
  }
  func.func @transform_3(%arg0: i32) -> (i32, i32, i32) {
    %c0_i32 = arith.constant 0 : i32
    %c0_i32_0 = arith.constant 0 : i32
    %c0_i32_1 = arith.constant 0 : i32
    return %arg0, %c0_i32, %c0_i32_0 : i32, i32, i32
  }
}

</mosaic_0001>

<bundles_post_ra>
// kernel: tpu_custom_call.1
= control target key start
LH: loop header
LB: loop body
LE: loop exit
PB: predicated region body
PF: predicated region fallthrough
CT: control target
= control target key end

     0   :  { %8 = vsyncpa [#allocation3], 0  ;;  %s605_s0 = inlined_call_operand.vmem [shape: f32[8,36], index: 0, kind: input, shape index: {}]   ;;  %s606_s1 = inlined_call_operand.vmem [shape: f32[8,1], index: 1, kind: input, shape index: {}]   ;;  %s607_s2 = inlined_call_operand.vmem [shape: f32[2,36,256], index: 2, kind: input, shape index: {}]   ;;  %s608_s3 = inlined_call_operand.hbm [shape: f32[2,8,256], index: 3, kind: output, shape index: {}]  }
   0x1   :  { %10 = vsyncpa [#allocation3 + $0x1], 0  ;;  %s499_s12 = smov 0   ;;  %s501_s13 = smov 0  }
   0x2   :  { %s503_s14 = smov 0   ;;  %s505_s15 = smov 0  }
   0x3 LB: > { %s520_s16 = sadd.s32 4294967295, %s474_s15   ;;  %s346_s17 = sadd.s32 4294967294, %s474_s15   ;;  %s474_s15 = sphi %s505_s15, %s614_s15   ;;  %s470_s14 = sphi %s503_s14, %s613_s14   ;;  %s466_s13 = sphi %s501_s13, %s612_s13   ;;  %s462_s12 = sphi %s499_s12, %s611_s12  }
   0x4   : > { %s524_s18 = sadd.s32 1, %s474_s15   ;;  %s91_s19 = sadd.s32 1, %s470_s14 }
   0x5   : > { %s88_s20 = ssub.s32 %s474_s15, %s524_s18  ;;  %p101_p0 = scmp.ne.s32.totalorder %s470_s14, %s466_s13 }
   0x6   : > { %p89_p1 = scmp.eq.s32.totalorder %s88_s20, 0  ;;  %p102_p2 = scmp.eq.s32.totalorder %s520_s16, 1 }
   0x7   : > { %p107_p3 = scmp.ne.s32.totalorder %s466_s13, %s462_s12  ;;  %p108_p4 = scmp.eq.s32.totalorder %s346_s17, 1 }
   0x8   : > { %s535_s21 = scalar_select %p89_p1, %s470_s14, %s91_s19  }
   0x9   : > { %p537_p5 = por %p102_p2, %p101_p0  ;;  %p541_p6 = por %p108_p4, %p107_p3 }
   0xa   : > { %p349_p7 = scmp.ge.s32.totalorder %s474_s15, 1  ;;  %p140_p8 = scmp.lt.s32.totalorder %s474_s15, 3 }
   0xc   : > { %p141_p9 = pnand %p349_p7, %p140_p8 }
   0xd   : > { %p164_p10 = scmp.lt.s32.totalorder (!%p141_p9), %s520_s16, 1  ;;  %v476_v0 = vmov (!%p141_p9), 0.0   ;;  %v477_v1 = vmov (!%p141_p9), 0   ;;  %v180_v2 = vld [vmem:[%s606_s1] sm:$0xff] (!%p141_p9)  ;;  %vm190_vm0 = vcmask (!%p141_p9), 1043456   ;;  %vm186_vm1 = vcmask (!%p141_p9), 293888  }
   0xe   : > { %144 = sbr.rel (%p141_p9) target bundleno = 270 (0x10e), region = 32  ;;  %261 = vmatprep.mubr.f32.mxu0 (!%p141_p9), %v476_v0  ;;  %411 = vset.pattern.permute.xlu0 (!%p141_p9), %v477_v1  ;;  %v169_v17 = vld [vmem:[%s605_s0] sm:$0xff] (!%p141_p9)  ;;  %s161_s6 = sand.u32 (!%p141_p9), 1, %s466_s13  }
   0xf   : > { %183 = vperm.xlu0 (!%p141_p9), %411, %v180_v2   ;;  %s350_s7 = sshll.u32 (!%p141_p9), %s161_s6, 4  ;;  %s360_s8 = sshll.u32 (!%p141_p9), %s520_s16, 8 }
  0x10   : > { %s163_s9 = scalar_lea.vmem (!%p141_p9), [#allocation2], %s350_s7  ;;  %s563_s19 = scalar_lea.hbm (!%p141_p9), %s608_s3, %s360_s8 }
  0x11   : > { %s287_s10 = sshll.u32 (!%p141_p9), %s163_s9, 4  ;;  %s273_s20 = scalar_lea.sflag (!%p141_p9), [#allocation3], %s161_s6  ;;  %s565_s10 = int_to_ptr.vmem [resolvable:$true] %s287_s10 }
  0x12   : > { %s412_s24 = scalar_lea.vmem (!%p141_p9), %s565_s10, 256 }
  0x13   : > { %p413_p11 = scmp.ne.s32.totalorder (!%p141_p9), %s565_s10, %s412_s24 }
  0x15   : > { %s165_s26 = scalar_select %p164_p10, %s520_s16, 1 }
  0x16   : > { %p414_p12 = pnand %p413_p11, %p537_p5  ;;  %s478_s16 = smov [#allocation2]  }
  0x17   : > { %s369_s27 = smul.u32 80, %s165_s26  ;;  %s416_s25 = sshll.u32 %s478_s16, 4  ;;  %s417_s25 = int_to_ptr.vmem [resolvable:$false] %s416_s25 }
  0x18   : > { %p415_p13 = pneg %p414_p12  ;;  %s418_s26 = scalar_lea.vmem %s417_s25, 512 }
  0x19   : > { %s168_s30 = scalar_lea.vmem %s607_s2, %s369_s27  ;;  %p419_p0 = scmp.lt.s32.totalorder %s565_s10, %s417_s25 }
  0x1a   : > { %v171_v3 = vld [vmem:[%s168_s30 + $0x8] sm:$0xff]  ;;  %v173_v4 = vld [vmem:[%s168_s30 + $0x18] sm:$0xff]  ;;  %v170_v5 = vld [vmem:[%s168_s30] sm:$0xff]  ;;  %p420_p1 = scmp.lt.s32.totalorder %s418_s26, %s412_s24 }
  0x1b   : > { %v361_v6 = vpack.c.bf16 %v173_v4, %v171_v3  ;;  %v172_v7 = vld [vmem:[%s168_s30 + $0x10] sm:$0xff]  ;;  %v175_v8 = vld [vmem:[%s168_s30 + $0x28] sm:$0xff]  ;;  %v177_v9 = vld [vmem:[%s168_s30 + $0x38] sm:$0xff] }
  0x1c   : > { %v363_v10 = vpack.c.bf16 %v172_v7, %v170_v5  ;;  %v365_v11 = vpack.c.bf16 %v177_v9, %v175_v8  ;;  %v174_v12 = vld [vmem:[%s168_s30 + $0x20] sm:$0xff]  ;;  %v176_v13 = vld [vmem:[%s168_s30 + $0x30] sm:$0xff]  ;;  %v179_v15 = vld [vmem:[%s168_s30 + $0x48] sm:$0xf]  ;;  %p421_p2 = por %p420_p1, %p419_p0 }
  0x1d   : > { %362 = vmatprep.subr.bf16.mxu0 %v361_v6  ;;  %v367_v14 = vpack.c.bf16 %v176_v13, %v174_v12  ;;  %v178_v16 = vld [vmem:[%s168_s30 + $0x40] sm:$0xf] }
  0x1e   : > { %364 = vmatpush1.bf16.msra.mxu0 %v363_v10  ;;  %p422_p3 = pnand %p421_p2, %p415_p13 }
  0x1f   : > { %366 = vmatprep.subr.bf16.mxu0 %v365_v11 }
  0x22   : > { %368 = vmatpush1.bf16.msra.mxu0 %v367_v14 }
  0x23   : > { %352 = vmatprep.subr.msk.mxu0 %vm190_vm0, %v179_v15 }
  0x26   : > { %353 = vmatpush1.msk.msra.mxu0 %vm190_vm0, %v178_v16 }
  0x27   : > { %354 = vmatmul.mubr.msk.f32.vlgmr.msra.gmra.mrb[0].mxu0 %vm186_vm1, %v169_v17 }
  0x8e   : > { %v184_v18 = vpop.permute.xlu0 %183 }
  0xfa   : > { %v263_v19 = vpop.f32.mrb[0].mxu0 }
  0xfb   : > { %v264_v20 = vadd.f32 %v263_v19, %v184_v18  ;;  %v265_v21 = vpop.f32.mrb[1].mxu0 }
  0xfc   : > { %v266_v22 = vadd.f32 %v265_v21, %v184_v18 }
  0xfd   : > { %v268_v23 = vmax.f32 %v264_v20, 0.0 }
  0xfe   : > { %v269_v24 = vmax.f32 %v266_v22, 0.0 }
  0xff   : > { %270 = vst [vmem:[%s163_s9] sm:$0xff] %v268_v23 }
 0x100   : > { %271 = vst [vmem:[%s163_s9 + $0x8] sm:$0xff] %v269_v24 }
 0x101   : > { %425 = shalt.err (!%p422_p3)
}
 0x102   : > { %s426_s27 = scalar_lea.hbm %s563_s19, 256  ;;  %s430_s30 = scalar_lea.hbm %s608_s3, 512 }
 0x103   : > { %p427_p4 = scmp.ne.s32.totalorder %s563_s19, %s426_s27  ;;  %p431_p9 = scmp.lt.u32.totalorder %s563_s19, %s608_s3 }
 0x104   : > { %p432_p10 = scmp.lt.u32.totalorder %s430_s30, %s426_s27  ;;  %p434_p12 = scmp.lt.u32.totalorder %s426_s27, %s563_s19 }
 0x105   : > { %p428_p7 = pnand %p427_p4, %p537_p5 }
 0x106   : > { %p433_p11 = por %p432_p10, %p431_p9 }
 0x107   : > { %p429_p8 = pneg %p428_p7 }
 0x108   : > { %p435_p13 = por %p434_p12, %p433_p11 }
 0x10a   : > { %p436_p0 = pnand %p435_p13, %p429_p8 }
 0x10c   : > { %439 = shalt.err (!%p436_p0)
}
 0x10d   : > { %370 = dma.vmem_to_hbm [thread:$0]  (%p537_p5), %s565_s10, 256, %s563_s19, %s273_s20  }
 0x10e PF: > { %p376_p1 = scmp.ge.s32.totalorder %s474_s15, 2  ;;  %s299_s6 = sand.u32 1, %s462_s12  }
 0x10f   : > { %s300_s7 = scalar_lea.sflag [#allocation3], %s299_s6 }
 0x110   : > { %p373_p2 = pnand %p376_p1, %p541_p6 }
 0x112   : > { %457 = dma.done.wait (!%p373_p2), %s300_s7, 256  }
 0x113   : > { %459 = vsyncadd (!%p373_p2), %s300_s7, 4294967040  ;;  %p13_p3 = scmp.ge.s32.totalorder %s524_s18, 4   ;;  %s611_s12 = smov %s466_s13 }
 0x114   : > { %s612_s13 = smov %s470_s14  ;;  %s613_s14 = smov %s535_s21 }
 0x115   : > { %s614_s15 = smov %s524_s18  ;;  %15 = sbr.rel (!%p13_p3) target bundleno = 3 (0x3), region = 67 }
 0x11c   :  { %305 = vsyncpa [#allocation3], 1 }
 0x11d   :  { %307 = vsyncpa [#allocation3 + $0x1], 1 }

</bundles_post_ra>
